<compile_context>
chip_gen: v7x
topology: tpu7x:2x2x1
jax: 0.10.0
libtpu: 0.0.40
codegen_flags: <defaults>
</compile_context>

<pallas_src>
import functools

import jax
import jax.numpy as jnp
from jax.experimental import pallas as pl
from jax.experimental.pallas import tpu as pltpu


def byol_kernel(patch_ref, wc_ref, bc_ref, pool_ref, w1_ref, b1_ref,
                g_ref, be_ref, w2_ref, b2_ref, rep_ref, proj_ref):
    # ---- base encoder: conv as a single im2col matmul, bias, ReLU ----
    acc = jnp.dot(patch_ref[...], wc_ref[...],          # [B*H*W, 9*Cin] x [9*Cin, F]
                  preferred_element_type=jnp.float32)
    acc = jnp.maximum(acc + bc_ref[...], 0.0)           # bias + ReLU

    # ---- global average pool on the MXU: [B, B*H*W] x [B*H*W, F] ----
    rep = jnp.dot(pool_ref[...], acc, preferred_element_type=jnp.float32)
    rep_ref[...] = rep                                  # representation (flatten is a no-op)

    # ---- projection head: Linear -> BatchNorm1d (train mode) -> ReLU -> Linear ----
    h = jnp.dot(rep, w1_ref[...], preferred_element_type=jnp.float32) + b1_ref[...]
    mu = jnp.mean(h, axis=0, keepdims=True)
    var = jnp.mean((h - mu) ** 2, axis=0, keepdims=True)    # biased var (PyTorch BN train)
    hn = (h - mu) * jax.lax.rsqrt(var + 1e-5)
    hn = jnp.maximum(hn * g_ref[...] + be_ref[...], 0.0)
    proj_ref[...] = (jnp.dot(hn, w2_ref[...], preferred_element_type=jnp.float32)
                     + b2_ref[...])


@jax.jit
def byol_forward(x_nchw, params):
    """x_nchw: [B, Cin, H, W] float32 (PyTorch layout). Returns (representation, projection)."""
    wconv, bconv, w1, b1, gamma, beta, w2, b2 = params
    B, Cin, H, W = x_nchw.shape
    Cout = wconv.shape[-1]
    P = w2.shape[-1]

    # --- glue (all fused under this jit): layout, pad, im2col, pooling matrix ---
    x = jnp.transpose(x_nchw, (0, 2, 3, 1)).astype(jnp.float32)      # NCHW -> NHWC
    xp = jnp.pad(x, ((0, 0), (1, 1), (1, 1), (0, 0)))                # 3x3 "same" pad
    # im2col: column order is (kh*3 + kw)*Cin + cin, matching wconv.reshape below.
    patches = jnp.concatenate(
        [xp[:, kh:kh + H, kw:kw + W, :] for kh in range(3) for kw in range(3)],
        axis=-1).reshape(B * H * W, 9 * Cin)
    wflat = wconv.reshape(9 * Cin, Cout)                             # (9, Cin, F) -> (9*Cin, F)

    # Block "pooling matrix": pool[b, r] = 1/(H*W) iff row r belongs to batch b.
    row_batch = jnp.repeat(jnp.arange(B), H * W)                     # [B*H*W]
    pool = (jnp.arange(B)[:, None] == row_batch[None, :]
            ).astype(jnp.float32) / float(H * W)                     # [B, B*H*W]

    vmem_spec = pl.BlockSpec(memory_space=pltpu.MemorySpace.VMEM)
    rep, proj = pl.pallas_call(
        byol_kernel,
        out_shape=(jax.ShapeDtypeStruct((B, Cout), jnp.float32),
                   jax.ShapeDtypeStruct((B, P), jnp.float32)),
        in_specs=[vmem_spec] * 10,
        out_specs=(vmem_spec, vmem_spec),
    )(patches, wflat, bconv, pool, w1, b1, gamma, beta, w2, b2)
    return rep, proj


def byol_reference(x_nchw, params):
    """Pure-JAX reference of the same forward pass (for verification)."""
    wconv, bconv, w1, b1, gamma, beta, w2, b2 = params
    B, Cin, H, W = x_nchw.shape
    Cout = wconv.shape[-1]
    x = jnp.transpose(x_nchw, (0, 2, 3, 1)).astype(jnp.float32)
    xp = jnp.pad(x, ((0, 0), (1, 1), (1, 1), (0, 0)))
    acc = jnp.zeros((B, H, W, Cout), jnp.float32)
    for kh in range(3):
        for kw in range(3):
            acc = acc + jnp.einsum('bhwc,cf->bhwf',
                                   xp[:, kh:kh + H, kw:kw + W, :],
                                   wconv[kh * 3 + kw])
    acc = jnp.maximum(acc + bconv.reshape(1, 1, 1, Cout), 0.0)
    rep = jnp.mean(acc, axis=(1, 2))
    h = rep @ w1 + b1
    mu = jnp.mean(h, axis=0, keepdims=True)
    var = jnp.mean((h - mu) ** 2, axis=0, keepdims=True)
    hn = (h - mu) / jnp.sqrt(var + 1e-5) * gamma + beta
    hn = jnp.maximum(hn, 0.0)
    proj = hn @ w2 + b2
    return rep, proj


def init_params(key, Cin=4, Cout=32, hidden=32, proj_dim=16):
    k = jax.random.split(key, 6)
    wconv = (0.1 * jax.random.normal(k[0], (3, 3, Cin, Cout), jnp.float32)
             ).reshape(9, Cin, Cout)
    bconv = 0.01 * jax.random.normal(k[1], (1, Cout), jnp.float32)
    w1 = 0.1 * jax.random.normal(k[2], (Cout, hidden), jnp.float32)
    b1 = 0.01 * jax.random.normal(k[3], (1, hidden), jnp.float32)
    gamma = jnp.ones((1, hidden), jnp.float32)      # BatchNorm1d default weight
    beta = jnp.zeros((1, hidden), jnp.float32)      # BatchNorm1d default bias
    w2 = 0.1 * jax.random.normal(k[4], (hidden, proj_dim), jnp.float32)
    b2 = 0.01 * jax.random.normal(k[5], (1, proj_dim), jnp.float32)
    return (wconv, bconv, w1, b1, gamma, beta, w2, b2)


if __name__ == "__main__":
    key = jax.random.PRNGKey(0)
    kx, kp = jax.random.split(key)
    B, Cin, H, W = 2, 4, 16, 16
    x = jax.random.normal(kx, (B, Cin, H, W), jnp.float32)   # NCHW, like PyTorch
    params = init_params(kp)

    rep, proj = byol_forward(x, params)
    rep, proj = jax.block_until_ready((rep, proj))

    rep_ref, proj_ref = byol_reference(x, params)
    assert rep.shape == (B, 32) and proj.shape == (B, 16)
    assert jnp.allclose(rep, rep_ref, atol=1e-4, rtol=1e-4)
    assert jnp.allclose(proj, proj_ref, atol=1e-4, rtol=1e-4)
    print("KERNEL_OK")
</pallas_src>

<mosaic_0001>
module attributes {stable_mosaic.version = 11 : i64} {
  func.func @byol_kernel(%arg0: memref<512x36xf32, #tpu.memory_space<vmem>>, %arg1: memref<36x32xf32, #tpu.memory_space<vmem>>, %arg2: memref<1x32xf32, #tpu.memory_space<vmem>>, %arg3: memref<2x512xf32, #tpu.memory_space<vmem>>, %arg4: memref<32x32xf32, #tpu.memory_space<vmem>>, %arg5: memref<1x32xf32, #tpu.memory_space<vmem>>, %arg6: memref<1x32xf32, #tpu.memory_space<vmem>>, %arg7: memref<1x32xf32, #tpu.memory_space<vmem>>, %arg8: memref<32x16xf32, #tpu.memory_space<vmem>>, %arg9: memref<1x16xf32, #tpu.memory_space<vmem>>, %arg10: memref<2x32xf32, #tpu.memory_space<vmem>>, %arg11: memref<2x16xf32, #tpu.memory_space<vmem>>) attributes {dimension_semantics = [], scalar_prefetch = 0 : i64, scratch_operands = 0 : i64, tpu.core_type = #tpu.core_type<tc>} {
    %c0 = arith.constant 0 : index
    %c0_0 = arith.constant 0 : index
    %0 = vector.load %arg0[%c0, %c0_0] : memref<512x36xf32, #tpu.memory_space<vmem>>, vector<512x36xf32>
    %c0_1 = arith.constant 0 : index
    %c0_2 = arith.constant 0 : index
    %1 = vector.load %arg1[%c0_1, %c0_2] : memref<36x32xf32, #tpu.memory_space<vmem>>, vector<36x32xf32>
    %cst = arith.constant dense<0.000000e+00> : vector<512x32xf32>
    %2 = tpu.matmul %0, %1, %cst {dimension_numbers = #tpu.dot_dimension_numbers<[1], [0], [0], [1], [0, 0, 1, 1], [], []>} : vector<512x36xf32>, vector<36x32xf32>, vector<512x32xf32> -> vector<512x32xf32>
    %c0_3 = arith.constant 0 : index
    %c0_4 = arith.constant 0 : index
    %3 = vector.load %arg2[%c0_3, %c0_4] : memref<1x32xf32, #tpu.memory_space<vmem>>, vector<1x32xf32>
    %4 = vector.broadcast %3 : vector<1x32xf32> to vector<512x32xf32>
    %5 = arith.addf %2, %4 : vector<512x32xf32>
    %cst_5 = arith.constant 0.000000e+00 : f32
    %6 = vector.broadcast %cst_5 : f32 to vector<512x32xf32>
    %7 = arith.maximumf %5, %6 : vector<512x32xf32>
    %c0_6 = arith.constant 0 : index
    %c0_7 = arith.constant 0 : index
    %8 = vector.load %arg3[%c0_6, %c0_7] : memref<2x512xf32, #tpu.memory_space<vmem>>, vector<2x512xf32>
    %cst_8 = arith.constant dense<0.000000e+00> : vector<2x32xf32>
    %9 = tpu.matmul %8, %7, %cst_8 {dimension_numbers = #tpu.dot_dimension_numbers<[1], [0], [0], [1], [0, 0, 1, 1], [], []>} : vector<2x512xf32>, vector<512x32xf32>, vector<2x32xf32> -> vector<2x32xf32>
    %c0_9 = arith.constant 0 : index
    %c0_10 = arith.constant 0 : index
    %10 = vector.load %arg10[%c0_9, %c0_10] : memref<2x32xf32, #tpu.memory_space<vmem>>, vector<2x32xf32>
    tpu.vector_store %arg10[%c0_9, %c0_10], %9 {strides = array<i32>} : memref<2x32xf32, #tpu.memory_space<vmem>>, vector<2x32xf32>,
    %c0_11 = arith.constant 0 : index
    %c0_12 = arith.constant 0 : index
    %11 = vector.load %arg4[%c0_11, %c0_12] : memref<32x32xf32, #tpu.memory_space<vmem>>, vector<32x32xf32>
    %cst_13 = arith.constant dense<0.000000e+00> : vector<2x32xf32>
    %12 = tpu.matmul %9, %11, %cst_13 {dimension_numbers = #tpu.dot_dimension_numbers<[1], [0], [0], [1], [0, 0, 1, 1], [], []>} : vector<2x32xf32>, vector<32x32xf32>, vector<2x32xf32> -> vector<2x32xf32>
    %c0_14 = arith.constant 0 : index
    %c0_15 = arith.constant 0 : index
    %13 = vector.load %arg5[%c0_14, %c0_15] : memref<1x32xf32, #tpu.memory_space<vmem>>, vector<1x32xf32>
    %14 = vector.broadcast %13 : vector<1x32xf32> to vector<2x32xf32>
    %15 = arith.addf %12, %14 : vector<2x32xf32>
    %cst_16 = arith.constant dense<0.000000e+00> : vector<32xf32>
    %16 = vector.multi_reduction <add>, %15, %cst_16 [0] : vector<2x32xf32> to vector<32xf32>
    %17 = vector.shape_cast %16 : vector<32xf32> to vector<1x32xf32>
    %cst_17 = arith.constant 2.000000e+00 : f32
    %18 = vector.broadcast %cst_17 : f32 to vector<1x32xf32>
    %19 = arith.divf %17, %18 : vector<1x32xf32>
    %20 = vector.broadcast %19 : vector<1x32xf32> to vector<2x32xf32>
    %21 = arith.subf %15, %20 : vector<2x32xf32>
    %22 = arith.mulf %21, %21 : vector<2x32xf32>
    %cst_18 = arith.constant dense<0.000000e+00> : vector<32xf32>
    %23 = vector.multi_reduction <add>, %22, %cst_18 [0] : vector<2x32xf32> to vector<32xf32>
    %24 = vector.shape_cast %23 : vector<32xf32> to vector<1x32xf32>
    %cst_19 = arith.constant 2.000000e+00 : f32
    %25 = vector.broadcast %cst_19 : f32 to vector<1x32xf32>
    %26 = arith.divf %24, %25 : vector<1x32xf32>
    %27 = vector.broadcast %19 : vector<1x32xf32> to vector<2x32xf32>
    %28 = arith.subf %15, %27 : vector<2x32xf32>
    %cst_20 = arith.constant 9.99999974E-6 : f32
    %29 = vector.broadcast %cst_20 : f32 to vector<1x32xf32>
    %30 = arith.addf %26, %29 : vector<1x32xf32>
    %31 = math.rsqrt %30 : vector<1x32xf32>
    %32 = vector.broadcast %31 : vector<1x32xf32> to vector<2x32xf32>
    %33 = arith.mulf %28, %32 : vector<2x32xf32>
    %c0_21 = arith.constant 0 : index
    %c0_22 = arith.constant 0 : index
    %34 = vector.load %arg6[%c0_21, %c0_22] : memref<1x32xf32, #tpu.memory_space<vmem>>, vector<1x32xf32>
    %35 = vector.broadcast %34 : vector<1x32xf32> to vector<2x32xf32>
    %36 = arith.mulf %33, %35 : vector<2x32xf32>
    %c0_23 = arith.constant 0 : index
    %c0_24 = arith.constant 0 : index
    %37 = vector.load %arg7[%c0_23, %c0_24] : memref<1x32xf32, #tpu.memory_space<vmem>>, vector<1x32xf32>
    %38 = vector.broadcast %37 : vector<1x32xf32> to vector<2x32xf32>
    %39 = arith.addf %36, %38 : vector<2x32xf32>
    %cst_25 = arith.constant 0.000000e+00 : f32
    %40 = vector.broadcast %cst_25 : f32 to vector<2x32xf32>
    %41 = arith.maximumf %39, %40 : vector<2x32xf32>
    %c0_26 = arith.constant 0 : index
    %c0_27 = arith.constant 0 : index
    %42 = vector.load %arg8[%c0_26, %c0_27] : memref<32x16xf32, #tpu.memory_space<vmem>>, vector<32x16xf32>
    %cst_28 = arith.constant dense<0.000000e+00> : vector<2x16xf32>
    %43 = tpu.matmul %41, %42, %cst_28 {dimension_numbers = #tpu.dot_dimension_numbers<[1], [0], [0], [1], [0, 0, 1, 1], [], []>} : vector<2x32xf32>, vector<32x16xf32>, vector<2x16xf32> -> vector<2x16xf32>
    %c0_29 = arith.constant 0 : index
    %c0_30 = arith.constant 0 : index
    %44 = vector.load %arg9[%c0_29, %c0_30] : memref<1x16xf32, #tpu.memory_space<vmem>>, vector<1x16xf32>
    %45 = vector.broadcast %44 : vector<1x16xf32> to vector<2x16xf32>
    %46 = arith.addf %43, %45 : vector<2x16xf32>
    %c0_31 = arith.constant 0 : index
    %c0_32 = arith.constant 0 : index
    %47 = vector.load %arg11[%c0_31, %c0_32] : memref<2x16xf32, #tpu.memory_space<vmem>>, vector<2x16xf32>
    tpu.vector_store %arg11[%c0_31, %c0_32], %46 {strides = array<i32>} : memref<2x16xf32, #tpu.memory_space<vmem>>, vector<2x16xf32>,
    return
  }
}

</mosaic_0001>

<bundles_post_ra>
// kernel: byol_forward.1
= control target key start
LH: loop header
LB: loop body
LE: loop exit
PB: predicated region body
PF: predicated region fallthrough
CT: control target
= control target key end

     0   :  { %17 = vsyncpa [#allocation3], 0  ;;  %vm115_vm0 = vcmask 293888   ;;  %vm308_vm1 = vcmask 1043456   ;;  %s2195_s0 = inlined_call_operand.vmem [shape: f32[512,36], index: 0, kind: input, shape index: {}]   ;;  %s2196_s1 = inlined_call_operand.vmem [shape: f32[36,32], index: 1, kind: input, shape index: {}]   ;;  %s2197_s2 = inlined_call_operand.vmem [shape: f32[1,32], index: 2, kind: input, shape index: {}]   ;;  %s2198_s3 = inlined_call_operand.vmem [shape: f32[2,512], index: 3, kind: input, shape index: {}]   ;;  %s2199_s4 = inlined_call_operand.vmem [shape: f32[32,32], index: 4, kind: input, shape index: {}]   ;;  %s2200_s5 = inlined_call_operand.vmem [shape: f32[1,32], index: 5, kind: input, shape index: {}]   ;;  %s2201_s6 = inlined_call_operand.vmem [shape: f32[1,32], index: 6, kind: input, shape index: {}]   ;;  %s2202_s7 = inlined_call_operand.vmem [shape: f32[1,32], index: 7, kind: input, shape index: {}]   ;;  %s2203_s8 = inlined_call_operand.vmem [shape: f32[32,16], index: 8, kind: input, shape index: {}]   ;;  %s2204_s9 = inlined_call_operand.vmem [shape: f32[1,16], index: 9, kind: input, shape index: {}]   ;;  %s2205_s10 = inlined_call_operand.hbm [shape: f32[2,32], index: 10, kind: output, shape index: {0}]   ;;  %s2206_s11 = inlined_call_operand.hbm [shape: f32[2,16], index: 11, kind: output, shape index: {1}]  }
   0x1   :  { %v103_v0 = vld [vmem:[%s2196_s1] sm:$0xff]  ;;  %v104_v1 = vld [vmem:[%s2196_s1 + $0x8] sm:$0xff]  ;;  %v105_v2 = vld [vmem:[%s2196_s1 + $0x10] sm:$0xff] }
   0x2   :  { %v1513_v3 = vpack.c.bf16 %v104_v1, %v103_v0  ;;  %v106_v4 = vld [vmem:[%s2196_s1 + $0x18] sm:$0xff]  ;;  %v39_v5 = vld [vmem:[%s2195_s0] sm:$0xff]  ;;  %v40_v8 = vld [vmem:[%s2195_s0 + $0x8] sm:$0xff] }
   0x3   :  { %v1517_v6 = vpack.c.bf16 %v106_v4, %v105_v2  ;;  %1395 = vmatprep.mubr.msk.f32.mxu0 %vm115_vm0, %v39_v5  ;;  %v107_v7 = vld [vmem:[%s2196_s1 + $0x20] sm:$0xf]  ;;  %v41_v9 = vld [vmem:[%s2195_s0 + $0x10] sm:$0xff]  ;;  %v86_v11 = vld [vmem:[%s2195_s0 + $0x178] sm:$0xff] }
   0x4   :  { %1514 = vmatprep.subr.bf16.mxu0 %v1513_v3  ;;  %1597 = vmatprep.subr.bf16.mxu1 %v1513_v3  ;;  %v85_v10 = vld [vmem:[%s2195_s0 + $0x170] sm:$0xff]  ;;  %v87_v12 = vld [vmem:[%s2195_s0 + $0x180] sm:$0xff]  ;;  %v42_v13 = vld [vmem:[%s2195_s0 + $0x18] sm:$0xff] }
   0x5   :  { %1516 = vmatpush3.bf16.msra.mxu0 %v1513_v3  ;;  %1600 = vmatpush3.bf16.msra.mxu1 %v1513_v3  ;;  %v43_v14 = vld [vmem:[%s2195_s0 + $0x20] sm:$0xff]  ;;  %v88_v15 = vld [vmem:[%s2195_s0 + $0x188] sm:$0xff]  ;;  %v89_v16 = vld [vmem:[%s2195_s0 + $0x190] sm:$0xff] }
   0x6   :  { %1518 = vmatprep.subr.bf16.mxu0 %v1517_v6  ;;  %1598 = vmatprep.subr.bf16.mxu1 %v1517_v6  ;;  %v44_v17 = vld [vmem:[%s2195_s0 + $0x28] sm:$0xff]  ;;  %v45_v18 = vld [vmem:[%s2195_s0 + $0x30] sm:$0xff]  ;;  %v90_v19 = vld [vmem:[%s2195_s0 + $0x198] sm:$0xff] }
   0x7   :  { %1464 = vmatprep.mubr.msk.f32.mxu1 %vm115_vm0, %v85_v10  ;;  %v91_v20 = vld [vmem:[%s2195_s0 + $0x1a0] sm:$0xff]  ;;  %v46_v21 = vld [vmem:[%s2195_s0 + $0x38] sm:$0xff]  ;;  %v92_v23 = vld [vmem:[%s2195_s0 + $0x1a8] sm:$0xff] }
   0x8   :  { %v47_v22 = vld [vmem:[%s2195_s0 + $0x40] sm:$0xff] }
   0x9   :  { %1520 = vmatpush3.bf16.msra.mxu0 %v1517_v6  ;;  %1601 = vmatpush3.bf16.msra.mxu1 %v1517_v6 }
   0xa   :  { %1393 = vmatprep.subr.msk.mxu0 %vm308_vm1, %v107_v7  ;;  %1599 = vmatprep.subr.msk.mxu1 %vm308_vm1, %v107_v7 }
   0xd   :  { %1394 = vmatpush3.msk.msra.mxu0 %vm308_vm1, %v107_v7  ;;  %1602 = vmatpush3.msk.msra.mxu1 %vm308_vm1, %v107_v7 }
   0xe   :  { %1396 = vmatmul.mubr.msk.f32.vlgmr.msra.gmra.mrb[0].mxu0 %vm115_vm0, %v40_v8  ;;  %1465 = vmatmul.mubr.msk.f32.vlgmr.msra.gmra.mrb[0].mxu1 %vm115_vm0, %v86_v11 }
   0xf   :  { %1398 = vmatprep.mubr.msk.f32.mxu0 %vm115_vm0, %v41_v9  ;;  %1467 = vmatprep.mubr.msk.f32.mxu1 %vm115_vm0, %v87_v12 }
  0x12   :  { %1399 = vmatmul.mubr.msk.f32.gmra.mrb[2].mxu0 %vm115_vm0, %v42_v13  ;;  %1468 = vmatmul.mubr.msk.f32.gmra.mrb[2].mxu1 %vm115_vm0, %v88_v15 }
  0x13   :  { %1401 = vmatprep.mubr.msk.f32.mxu0 %vm115_vm0, %v43_v14  ;;  %1470 = vmatprep.mubr.msk.f32.mxu1 %vm115_vm0, %v89_v16 }
  0x16   :  { %1402 = vmatmul.mubr.msk.f32.gmra.mrb[4].mxu0 %vm115_vm0, %v44_v17  ;;  %1471 = vmatmul.mubr.msk.f32.gmra.mrb[4].mxu1 %vm115_vm0, %v90_v19 }
  0x17   :  { %1404 = vmatprep.mubr.msk.f32.mxu0 %vm115_vm0, %v45_v18  ;;  %1473 = vmatprep.mubr.msk.f32.mxu1 %vm115_vm0, %v91_v20 }
  0x18   :  { %18 = vsyncpa [#allocation5], 0  ;;  %v93_v24 = vld [vmem:[%s2195_s0 + $0x1b0] sm:$0xff]  ;;  %v48_v25 = vld [vmem:[%s2195_s0 + $0x48] sm:$0xff]  ;;  %v1660_v7 = vmov 1983009808   ;;  %v767_v9 = vlaneseq }
  0x19   :  { %v49_v26 = vld [vmem:[%s2195_s0 + $0x50] sm:$0xff]  ;;  %v94_v27 = vld [vmem:[%s2195_s0 + $0x1b8] sm:$0xff]  ;;  %v95_v28 = vld [vmem:[%s2195_s0 + $0x1c0] sm:$0xff]  ;;  %v765_v8 = vunpack.c.l.s4 %v1660_v7  ;;  %vm1662_vm2 = vmmov 0   ;;  %vm937_vm3 = vcmask 261120   ;;  %vm924_vm4 = vcmask 254976  }
  0x1a   :  { %1405 = vmatmul.mubr.msk.f32.gmra.mrb[6].mxu0 %vm115_vm0, %v46_v21  ;;  %1474 = vmatmul.mubr.msk.f32.gmra.mrb[6].mxu1 %vm115_vm0, %v92_v23  ;;  %v50_v29 = vld [vmem:[%s2195_s0 + $0x58] sm:$0xff]  ;;  %v51_v30 = vld [vmem:[%s2195_s0 + $0x60] sm:$0xff]  ;;  %v96_v31 = vld [vmem:[%s2195_s0 + $0x1c8] sm:$0xff]  ;;  %v768_v11 = vshrl.u32 %v767_v9, 7  ;;  %s1664_s1 = smov [#allocation2]  }
  0x1b   :  { %1407 = vmatprep.mubr.msk.f32.mxu0 %vm115_vm0, %v47_v22  ;;  %1476 = vmatprep.mubr.msk.f32.mxu1 %vm115_vm0, %v93_v24  ;;  %v97_v32 = vld [vmem:[%s2195_s0 + $0x1d0] sm:$0xff]  ;;  %v52_v33 = vld [vmem:[%s2195_s0 + $0x68] sm:$0xff]  ;;  %v98_v35 = vld [vmem:[%s2195_s0 + $0x1d8] sm:$0xff]  ;;  %v766_v10 = vunpack.c.0.s8 %v765_v8  ;;  %s1142_s16 = sshll.u32 %s1664_s1, 4  ;;  %s1143_s16 = int_to_ptr.vmem [resolvable:$true] %s1142_s16 }
  0x1c   :  { %v53_v34 = vld [vmem:[%s2195_s0 + $0x70] sm:$0xff]  ;;  %v99_v36 = vld [vmem:[%s2195_s0 + $0x1e0] sm:$0xff]  ;;  %v54_v37 = vld [vmem:[%s2195_s0 + $0x78] sm:$0xff]  ;;  %p1617_p1 = scmp.lt.s32.totalorder %s1143_s16, %s1143_s16 }
  0x1d   :  { %v55_v38 = vld [vmem:[%s2195_s0 + $0x80] sm:$0xff]  ;;  %v100_v39 = vld [vmem:[%s2195_s0 + $0x1e8] sm:$0xff]  ;;  %v101_v40 = vld [vmem:[%s2195_s0 + $0x1f0] sm:$0xff]  ;;  %v769_v12 = vsub.s32 %v766_v10, %v768_v11 }
  0x1e   :  { %1408 = vmatmul.mubr.msk.f32.gmra.mrb[8].mxu0 %vm115_vm0, %v48_v25  ;;  %1477 = vmatmul.mubr.msk.f32.gmra.mrb[8].mxu1 %vm115_vm0, %v94_v27  ;;  %v56_v41 = vld [vmem:[%s2195_s0 + $0x88] sm:$0xff]  ;;  %v57_v42 = vld [vmem:[%s2195_s0 + $0x90] sm:$0xff]  ;;  %v102_v43 = vld [vmem:[%s2195_s0 + $0x1f8] sm:$0xff] }
  0x1f   :  { %1410 = vmatprep.mubr.msk.f32.mxu0 %vm115_vm0, %v49_v26  ;;  %1479 = vmatprep.mubr.msk.f32.mxu1 %vm115_vm0, %v95_v28  ;;  %v58_v44 = vld [vmem:[%s2195_s0 + $0x98] sm:$0xff]  ;;  %v59_v45 = vld [vmem:[%s2195_s0 + $0xa0] sm:$0xff]  ;;  %v60_v46 = vld [vmem:[%s2195_s0 + $0xa8] sm:$0xff] }
  0x20   :  { %v61_v47 = vld [vmem:[%s2195_s0 + $0xb0] sm:$0xff]  ;;  %v62_v48 = vld [vmem:[%s2195_s0 + $0xb8] sm:$0xff]  ;;  %v63_v49 = vld [vmem:[%s2195_s0 + $0xc0] sm:$0xff] }
  0x21   :  { %v64_v50 = vld [vmem:[%s2195_s0 + $0xc8] sm:$0xff]  ;;  %v65_v51 = vld [vmem:[%s2195_s0 + $0xd0] sm:$0xff]  ;;  %v66_v52 = vld [vmem:[%s2195_s0 + $0xd8] sm:$0xff] }
  0x22   :  { %1411 = vmatmul.mubr.msk.f32.gmra.mrb[10].mxu0 %vm115_vm0, %v50_v29  ;;  %1480 = vmatmul.mubr.msk.f32.gmra.mrb[10].mxu1 %vm115_vm0, %v96_v31  ;;  %v67_v53 = vld [vmem:[%s2195_s0 + $0xe0] sm:$0xff]  ;;  %v68_v54 = vld [vmem:[%s2195_s0 + $0xe8] sm:$0xff]  ;;  %v69_v55 = vld [vmem:[%s2195_s0 + $0xf0] sm:$0xff] }
  0x23   :  { %1413 = vmatprep.mubr.msk.f32.mxu0 %vm115_vm0, %v51_v30  ;;  %1482 = vmatprep.mubr.msk.f32.mxu1 %vm115_vm0, %v97_v32  ;;  %v70_v56 = vld [vmem:[%s2195_s0 + $0xf8] sm:$0xff]  ;;  %v71_v57 = vld [vmem:[%s2195_s0 + $0x100] sm:$0xff]  ;;  %v72_v58 = vld [vmem:[%s2195_s0 + $0x108] sm:$0xff] }
  0x24   :  { %v73_v59 = vld [vmem:[%s2195_s0 + $0x110] sm:$0xff]  ;;  %v74_v60 = vld [vmem:[%s2195_s0 + $0x118] sm:$0xff]  ;;  %v75_v61 = vld [vmem:[%s2195_s0 + $0x120] sm:$0xff] }
  0x25   :  { %v76_v62 = vld [vmem:[%s2195_s0 + $0x128] sm:$0xff]  ;;  %v77_v63 = vld [vmem:[%s2195_s0 + $0x130] sm:$0xff]  ;;  %v78_v0 = vld [vmem:[%s2195_s0 + $0x138] sm:$0xff] }
  0x26   :  { %1414 = vmatmul.mubr.msk.f32.gmra.mrb[12].mxu0 %vm115_vm0, %v52_v33  ;;  %1483 = vmatmul.mubr.msk.f32.gmra.mrb[12].mxu1 %vm115_vm0, %v98_v35  ;;  %v79_v1 = vld [vmem:[%s2195_s0 + $0x140] sm:$0xff]  ;;  %v80_v2 = vld [vmem:[%s2195_s0 + $0x148] sm:$0xff]  ;;  %v81_v3 = vld [vmem:[%s2195_s0 + $0x150] sm:$0xff] }
  0x27   :  { %1416 = vmatprep.mubr.msk.f32.mxu0 %vm115_vm0, %v53_v34  ;;  %1485 = vmatprep.mubr.msk.f32.mxu1 %vm115_vm0, %v99_v36  ;;  %v82_v4 = vld [vmem:[%s2195_s0 + $0x158] sm:$0xff]  ;;  %v83_v5 = vld [vmem:[%s2195_s0 + $0x160] sm:$0xff]  ;;  %v84_v6 = vld [vmem:[%s2195_s0 + $0x168] sm:$0xff]  ;;  %s1612_s0 = scalar_lea.vmem %s1143_s16, 32 }
  0x28   :  { %v761_v13 = vld [vmem:[%s2198_s3] sm:$0xff]  ;;  %p1613_p0 = scmp.ne.s32.totalorder %s1143_s16, %s1612_s0  ;;  %p1618_p2 = scmp.lt.s32.totalorder %s1612_s0, %s1612_s0 }
  0x29   :  { %v2000_v14 = vrot.slane %v761_v13, %v769_v12  ;;  %v763_v16 = vcombine.high %v761_v13, %v761_v13  ;;  %v2009_v18 = vld [vmem:[%s2197_s2] ss:$0 sm:$0xff] }
  0x2a   :  { %1417 = vmatmul.mubr.msk.f32.gmra.mrb[14].mxu0 %vm115_vm0, %v54_v37  ;;  %1486 = vmatmul.mubr.msk.f32.gmra.mrb[14].mxu1 %vm115_vm0, %v100_v39  ;;  %p1619_p3 = por %p1618_p2, %p1617_p1 }
  0x2b   :  { %1419 = vmatprep.mubr.msk.f32.mxu0 %vm115_vm0, %v55_v38  ;;  %1488 = vmatprep.mubr.msk.f32.mxu1 %vm115_vm0, %v101_v40  ;;  %v778_v15 = vcombine.high %v2000_v14, %v2000_v14  ;;  %v2004_v17 = vrot.slane %v763_v16, %v769_v12 }
  0x2c   :  { %p1620_p4 = pnand %p1619_p3, %p1613_p0 }
  0x2e   :  { %1420 = vmatmul.mubr.msk.f32.gmra.mrb[16].mxu0 %vm115_vm0, %v56_v41  ;;  %1489 = vmatmul.mubr.msk.f32.gmra.mrb[16].mxu1 %vm115_vm0, %v102_v43 }
  0x2f   :  { %1422 = vmatprep.mubr.msk.f32.mxu0 %vm115_vm0, %v57_v42  ;;  %848 = vmatprep.mubr.f32.mxu1 %v778_v15 }
  0x32   :  { %1423 = vmatmul.mubr.msk.f32.gmra.mrb[18].mxu0 %vm115_vm0, %v58_v44 }
  0x33   :  { %1425 = vmatprep.mubr.msk.f32.mxu0 %vm115_vm0, %v59_v45 }
  0x36   :  { %1426 = vmatmul.mubr.msk.f32.gmra.mrb[20].mxu0 %vm115_vm0, %v60_v46 }
  0x37   :  { %1428 = vmatprep.mubr.msk.f32.mxu0 %vm115_vm0, %v61_v47 }
  0x3a   :  { %1429 = vmatmul.mubr.msk.f32.gmra.mrb[22].mxu0 %vm115_vm0, %v62_v48 }
  0x3b   :  { %1431 = vmatprep.mubr.msk.f32.mxu0 %vm115_vm0, %v63_v49 }
  0x3e   :  { %1432 = vmatmul.mubr.msk.f32.gmra.mrb[24].mxu0 %vm115_vm0, %v64_v50 }
  0x3f   :  { %1434 = vmatprep.mubr.msk.f32.mxu0 %vm115_vm0, %v65_v51 }
  0x42   :  { %1435 = vmatmul.mubr.msk.f32.gmra.mrb[26].mxu0 %vm115_vm0, %v66_v52 }
  0x43   :  { %1437 = vmatprep.mubr.msk.f32.mxu0 %vm115_vm0, %v67_v53 }
  0x46   :  { %1438 = vmatmul.mubr.msk.f32.gmra.mrb[28].mxu0 %vm115_vm0, %v68_v54 }
  0x47   :  { %1440 = vmatprep.mubr.msk.f32.mxu0 %vm115_vm0, %v69_v55 }
  0x4a   :  { %1441 = vmatmul.mubr.msk.f32.gmra.mrb[30].mxu0 %vm115_vm0, %v70_v56 }
  0x4b   :  { %1443 = vmatprep.mubr.msk.f32.mxu0 %vm115_vm0, %v71_v57 }
  0x4e   :  { %1444 = vmatmul.mubr.msk.f32.gmra.mrb[32].mxu0 %vm115_vm0, %v72_v58 }
  0x4f   :  { %1446 = vmatprep.mubr.msk.f32.mxu0 %vm115_vm0, %v73_v59 }
  0x52   :  { %1447 = vmatmul.mubr.msk.f32.gmra.mrb[34].mxu0 %vm115_vm0, %v74_v60 }
  0x53   :  { %1449 = vmatprep.mubr.msk.f32.mxu0 %vm115_vm0, %v75_v61 }
  0x56   :  { %1450 = vmatmul.mubr.msk.f32.gmra.mrb[36].mxu0 %vm115_vm0, %v76_v62 }
  0x57   :  { %1452 = vmatprep.mubr.msk.f32.mxu0 %vm115_vm0, %v77_v63 }
  0x5a   :  { %1453 = vmatmul.mubr.msk.f32.gmra.mrb[38].mxu0 %vm115_vm0, %v78_v0 }
  0x5b   :  { %1455 = vmatprep.mubr.msk.f32.mxu0 %vm115_vm0, %v79_v1 }
  0x5e   :  { %1456 = vmatmul.mubr.msk.f32.gmra.mrb[40].mxu0 %vm115_vm0, %v80_v2 }
  0x5f   :  { %1458 = vmatprep.mubr.msk.f32.mxu0 %vm115_vm0, %v81_v3 }
  0x62   :  { %1459 = vmatmul.mubr.msk.f32.gmra.mrb[42].mxu0 %vm115_vm0, %v82_v4 }
  0x63   :  { %1461 = vmatprep.mubr.msk.f32.mxu0 %vm115_vm0, %v83_v5 }
  0x66   :  { %1462 = vmatmul.mubr.msk.f32.gmra.mrb[44].mxu0 %vm115_vm0, %v84_v6 }
  0xe1   :  { %v1397_v19 = vpop.f32.mrb[0].mxu0  ;;  %v1466_v22 = vpop.f32.mrb[0].mxu1 }
  0xe2   :  { %v384_v20 = vadd.f32 %v1397_v19, %v2009_v18  ;;  %v378_v21 = vpop.f32.mrb[1].mxu0  ;;  %v614_v24 = vadd.f32 %v1466_v22, %v2009_v18  ;;  %v608_v25 = vpop.f32.mrb[1].mxu1 }
  0xe3   :  { %v379_v23 = vadd.f32 %v2009_v18, %v378_v21  ;;  %v609_v27 = vadd.f32 %v2009_v18, %v608_v25 }
  0xe4   :  { %v698_v26 = vmax.f32 %v384_v20, 0.0  ;;  %v744_v30 = vmax.f32 %v614_v24, 0.0 }
  0xe5   :  { %v697_v28 = vmax.f32 %v379_v23, 0.0  ;;  %v1400_v29 = vpop.f32.mrb[2].mxu0  ;;  %v743_v33 = vmax.f32 %v609_v27, 0.0  ;;  %v1469_v34 = vpop.f32.mrb[2].mxu1 }
  0xe6   :  { %v394_v31 = vadd.f32 %v1400_v29, %v2009_v18  ;;  %v388_v32 = vpop.f32.mrb[3].mxu0  ;;  %v624_v37 = vadd.f32 %v1469_v34, %v2009_v18  ;;  %v618_v38 = vpop.f32.mrb[3].mxu1 }
  0xe7   :  { %v2016_v35 = vpack.c.bf16 %v698_v26, %v697_v28  ;;  %v389_v36 = vadd.f32 %v2009_v18, %v388_v32  ;;  %v2020_v40 = vpack.c.bf16 %v744_v30, %v743_v33  ;;  %v619_v41 = vadd.f32 %v2009_v18, %v618_v38 }
  0xe8   :  { %v700_v39 = vmax.f32 %v394_v31, 0.0  ;;  %v746_v44 = vmax.f32 %v624_v37, 0.0 }
  0xe9   :  { %v699_v42 = vmax.f32 %v389_v36, 0.0  ;;  %v1403_v43 = vpop.f32.mrb[4].mxu0  ;;  %v745_v47 = vmax.f32 %v619_v41, 0.0  ;;  %v1472_v48 = vpop.f32.mrb[4].mxu1 }
  0xea   :  { %v404_v45 = vadd.f32 %v1403_v43, %v2009_v18  ;;  %v398_v46 = vpop.f32.mrb[5].mxu0  ;;  %v634_v51 = vadd.f32 %v1472_v48, %v2009_v18  ;;  %v628_v52 = vpop.f32.mrb[5].mxu1 }
  0xeb   :  { %v2024_v49 = vpack.c.bf16 %v700_v39, %v699_v42  ;;  %v399_v50 = vadd.f32 %v2009_v18, %v398_v46  ;;  %v2028_v54 = vpack.c.bf16 %v746_v44, %v745_v47  ;;  %v629_v55 = vadd.f32 %v2009_v18, %v628_v52 }
  0xec   :  { %v702_v53 = vmax.f32 %v404_v45, 0.0  ;;  %v748_v58 = vmax.f32 %v634_v51, 0.0 }
  0xed   :  { %v701_v56 = vmax.f32 %v399_v50, 0.0  ;;  %v1406_v57 = vpop.f32.mrb[6].mxu0  ;;  %v747_v61 = vmax.f32 %v629_v55, 0.0  ;;  %v1475_v62 = vpop.f32.mrb[6].mxu1 }
  0xee   :  { %v414_v59 = vadd.f32 %v1406_v57, %v2009_v18  ;;  %v408_v60 = vpop.f32.mrb[7].mxu0  ;;  %v644_v1 = vadd.f32 %v1475_v62, %v2009_v18  ;;  %v638_v2 = vpop.f32.mrb[7].mxu1 }
  0xef   :  { %v2032_v63 = vpack.c.bf16 %v702_v53, %v701_v56  ;;  %v409_v0 = vadd.f32 %v2009_v18, %v408_v60  ;;  %v2036_v4 = vpack.c.bf16 %v748_v58, %v747_v61  ;;  %v639_v5 = vadd.f32 %v2009_v18, %v638_v2 }
  0xf0   :  { %v704_v3 = vmax.f32 %v414_v59, 0.0  ;;  %v750_v8 = vmax.f32 %v644_v1, 0.0 }
  0xf1   :  { %v703_v6 = vmax.f32 %v409_v0, 0.0  ;;  %v1409_v7 = vpop.f32.mrb[8].mxu0  ;;  %v749_v11 = vmax.f32 %v639_v5, 0.0  ;;  %v1478_v12 = vpop.f32.mrb[8].mxu1 }
  0xf2   :  { %v424_v9 = vadd.f32 %v1409_v7, %v2009_v18  ;;  %v418_v10 = vpop.f32.mrb[9].mxu0  ;;  %v654_v16 = vadd.f32 %v1478_v12, %v2009_v18  ;;  %v648_v19 = vpop.f32.mrb[9].mxu1 }
  0xf3   :  { %v2040_v13 = vpack.c.bf16 %v704_v3, %v703_v6  ;;  %v419_v15 = vadd.f32 %v2009_v18, %v418_v10  ;;  %v2044_v21 = vpack.c.bf16 %v750_v8, %v749_v11  ;;  %v649_v22 = vadd.f32 %v2009_v18, %v648_v19 }
  0xf4   :  { %v706_v20 = vmax.f32 %v424_v9, 0.0  ;;  %v752_v25 = vmax.f32 %v654_v16, 0.0 }
  0xf5   :  { %v705_v23 = vmax.f32 %v419_v15, 0.0  ;;  %v1412_v24 = vpop.f32.mrb[10].mxu0  ;;  %v751_v28 = vmax.f32 %v649_v22, 0.0  ;;  %v1481_v29 = vpop.f32.mrb[10].mxu1 }
  0xf6   :  { %v434_v26 = vadd.f32 %v1412_v24, %v2009_v18  ;;  %v428_v27 = vpop.f32.mrb[11].mxu0  ;;  %v664_v32 = vadd.f32 %v1481_v29, %v2009_v18  ;;  %v658_v33 = vpop.f32.mrb[11].mxu1 }
  0xf7   :  { %v2048_v30 = vpack.c.bf16 %v706_v20, %v705_v23  ;;  %v429_v31 = vadd.f32 %v2009_v18, %v428_v27  ;;  %v2052_v36 = vpack.c.bf16 %v752_v25, %v751_v28  ;;  %v659_v37 = vadd.f32 %v2009_v18, %v658_v33 }
  0xf8   :  { %v708_v34 = vmax.f32 %v434_v26, 0.0  ;;  %v754_v41 = vmax.f32 %v664_v32, 0.0 }
  0xf9   :  { %v707_v38 = vmax.f32 %v429_v31, 0.0  ;;  %v1415_v39 = vpop.f32.mrb[12].mxu0  ;;  %v753_v44 = vmax.f32 %v659_v37, 0.0  ;;  %v1484_v45 = vpop.f32.mrb[12].mxu1 }
  0xfa   :  { %v444_v42 = vadd.f32 %v1415_v39, %v2009_v18  ;;  %v438_v43 = vpop.f32.mrb[13].mxu0  ;;  %v674_v48 = vadd.f32 %v1484_v45, %v2009_v18  ;;  %v668_v50 = vpop.f32.mrb[13].mxu1 }
  0xfb   :  { %v2056_v46 = vpack.c.bf16 %v708_v34, %v707_v38  ;;  %v439_v47 = vadd.f32 %v2009_v18, %v438_v43  ;;  %v2060_v52 = vpack.c.bf16 %v754_v41, %v753_v44  ;;  %v669_v53 = vadd.f32 %v2009_v18, %v668_v50 }
  0xfc   :  { %v710_v51 = vmax.f32 %v444_v42, 0.0  ;;  %v756_v57 = vmax.f32 %v674_v48, 0.0 }
  0xfd   :  { %v709_v55 = vmax.f32 %v439_v47, 0.0  ;;  %v1418_v56 = vpop.f32.mrb[14].mxu0  ;;  %v755_v60 = vmax.f32 %v669_v53, 0.0  ;;  %v1487_v61 = vpop.f32.mrb[14].mxu1 }
  0xfe   :  { %v454_v58 = vadd.f32 %v1418_v56, %v2009_v18  ;;  %v448_v59 = vpop.f32.mrb[15].mxu0  ;;  %v684_v1 = vadd.f32 %v1487_v61, %v2009_v18  ;;  %v678_v2 = vpop.f32.mrb[15].mxu1 }
  0xff   :  { %v2064_v62 = vpack.c.bf16 %v710_v51, %v709_v55  ;;  %v449_v0 = vadd.f32 %v2009_v18, %v448_v59  ;;  %v2068_v5 = vpack.c.bf16 %v756_v57, %v755_v60  ;;  %v679_v6 = vadd.f32 %v2009_v18, %v678_v2 }
 0x100   :  { %v712_v3 = vmax.f32 %v454_v58, 0.0  ;;  %v758_v9 = vmax.f32 %v684_v1, 0.0 }
 0x101   :  { %v711_v7 = vmax.f32 %v449_v0, 0.0  ;;  %v1421_v8 = vpop.f32.mrb[16].mxu0  ;;  %v757_v12 = vmax.f32 %v679_v6, 0.0  ;;  %v1490_v15 = vpop.f32.mrb[16].mxu1 }
 0x102   :  { %v464_v10 = vadd.f32 %v1421_v8, %v2009_v18  ;;  %v458_v11 = vpop.f32.mrb[17].mxu0  ;;  %v694_v20 = vadd.f32 %v1490_v15, %v2009_v18  ;;  %v688_v22 = vpop.f32.mrb[17].mxu1 }
 0x103   :  { %v2072_v16 = vpack.c.bf16 %v712_v3, %v711_v7  ;;  %v459_v19 = vadd.f32 %v2009_v18, %v458_v11  ;;  %v2076_v24 = vpack.c.bf16 %v758_v9, %v757_v12  ;;  %v689_v25 = vadd.f32 %v2009_v18, %v688_v22 }
 0x104   :  { %v714_v23 = vmax.f32 %v464_v10, 0.0  ;;  %v760_v28 = vmax.f32 %v694_v20, 0.0 }
 0x105   :  { %v713_v26 = vmax.f32 %v459_v19, 0.0  ;;  %v1424_v27 = vpop.f32.mrb[18].mxu0  ;;  %v759_v32 = vmax.f32 %v689_v25, 0.0 }
 0x106   :  { %v474_v29 = vadd.f32 %v1424_v27, %v2009_v18  ;;  %v468_v31 = vpop.f32.mrb[19].mxu0 }
 0x107   :  { %v1521_v33 = vpack.c.bf16 %v714_v23, %v713_v26  ;;  %v469_v34 = vadd.f32 %v2009_v18, %v468_v31  ;;  %v2081_v38 = vpack.c.bf16 %v760_v28, %v759_v32 }
 0x108   :  { %v716_v37 = vmax.f32 %v474_v29, 0.0 }
 0x109   :  { %v715_v39 = vmax.f32 %v469_v34, 0.0  ;;  %v1427_v41 = vpop.f32.mrb[20].mxu0  ;;  %1522 = vmatprep.subr.bf16.mxu1 %v1521_v33 }
 0x10a   :  { %v484_v42 = vadd.f32 %v1427_v41, %v2009_v18  ;;  %v478_v43 = vpop.f32.mrb[21].mxu0  ;;  %1524 = vmatpush3.bf16.msra.mxu1 %v2016_v35 }
 0x10b   :  { %v1525_v44 = vpack.c.bf16 %v716_v37, %v715_v39  ;;  %v479_v45 = vadd.f32 %v2009_v18, %v478_v43  ;;  %v779_v43 = vcombine.high %v2004_v17, %v2004_v17 }
 0x10c   :  { %v718_v47 = vmax.f32 %v484_v42, 0.0 }
 0x10d   :  { %v717_v48 = vmax.f32 %v479_v45, 0.0  ;;  %v1430_v50 = vpop.f32.mrb[22].mxu0  ;;  %1526 = vmatprep.subr.bf16.mxu1 %v1525_v44 }
 0x10e   :  { %v494_v51 = vadd.f32 %v1430_v50, %v2009_v18  ;;  %v488_v53 = vpop.f32.mrb[23].mxu0  ;;  %1528 = vmatpush3.bf16.msra.mxu1 %v2024_v49 }
 0x10f   :  { %v1529_v55 = vpack.c.bf16 %v718_v47, %v717_v48  ;;  %v489_v56 = vadd.f32 %v2009_v18, %v488_v53 }
 0x110   :  { %v720_v57 = vmax.f32 %v494_v51, 0.0 }
 0x111   :  { %v719_v58 = vmax.f32 %v489_v56, 0.0  ;;  %v1433_v59 = vpop.f32.mrb[24].mxu0  ;;  %1530 = vmatprep.subr.bf16.mxu1 %v1529_v55 }
 0x112   :  { %v504_v35 = vadd.f32 %v1433_v59, %v2009_v18  ;;  %v498_v60 = vpop.f32.mrb[25].mxu0  ;;  %1532 = vmatpush3.bf16.msra.mxu1 %v2032_v63 }
 0x113   :  { %v1533_v61 = vpack.c.bf16 %v720_v57, %v719_v58  ;;  %v499_v0 = vadd.f32 %v2009_v18, %v498_v60 }
 0x114   :  { %v722_v1 = vmax.f32 %v504_v35, 0.0 }
 0x115   :  { %v721_v2 = vmax.f32 %v499_v0, 0.0  ;;  %v1436_v3 = vpop.f32.mrb[26].mxu0  ;;  %1534 = vmatprep.subr.bf16.mxu1 %v1533_v61 }
 0x116   :  { %v514_v49 = vadd.f32 %v1436_v3, %v2009_v18  ;;  %v508_v6 = vpop.f32.mrb[27].mxu0  ;;  %1536 = vmatpush3.bf16.msra.mxu1 %v2040_v13 }
 0x117   :  { %v1537_v7 = vpack.c.bf16 %v722_v1, %v721_v2  ;;  %v509_v8 = vadd.f32 %v2009_v18, %v508_v6 }
 0x118   :  { %v724_v9 = vmax.f32 %v514_v49, 0.0 }
 0x119   :  { %v723_v10 = vmax.f32 %v509_v8, 0.0  ;;  %v1439_v11 = vpop.f32.mrb[28].mxu0  ;;  %1538 = vmatprep.subr.bf16.mxu1 %v1537_v7 }
 0x11a   :  { %v524_v63 = vadd.f32 %v1439_v11, %v2009_v18  ;;  %v518_v12 = vpop.f32.mrb[29].mxu0  ;;  %1540 = vmatpush3.bf16.msra.mxu1 %v2048_v30 }
 0x11b   :  { %v1541_v15 = vpack.c.bf16 %v724_v9, %v723_v10  ;;  %v519_v19 = vadd.f32 %v2009_v18, %v518_v12 }
 0x11c   :  { %v726_v20 = vmax.f32 %v524_v63, 0.0 }
 0x11d   :  { %v725_v22 = vmax.f32 %v519_v19, 0.0  ;;  %v1442_v23 = vpop.f32.mrb[30].mxu0  ;;  %1542 = vmatprep.subr.bf16.mxu1 %v1541_v15 }
 0x11e   :  { %v534_v13 = vadd.f32 %v1442_v23, %v2009_v18  ;;  %v528_v25 = vpop.f32.mrb[31].mxu0  ;;  %1544 = vmatpush3.bf16.msra.mxu1 %v2056_v46 }
 0x11f   :  { %v1545_v26 = vpack.c.bf16 %v726_v20, %v725_v22  ;;  %v529_v27 = vadd.f32 %v2009_v18, %v528_v25 }
 0x120   :  { %v728_v28 = vmax.f32 %v534_v13, 0.0 }
 0x121   :  { %v727_v29 = vmax.f32 %v529_v27, 0.0  ;;  %1546 = vmatprep.subr.bf16.mxu1 %v1545_v26  ;;  %v1445_v31 = vpop.f32.mrb[32].mxu0 }
 0x122   :  { %v544_v30 = vadd.f32 %v1445_v31, %v2009_v18  ;;  %1548 = vmatpush3.bf16.msra.mxu1 %v2064_v62  ;;  %v538_v32 = vpop.f32.mrb[33].mxu0 }
 0x123   :  { %v1549_v33 = vpack.c.bf16 %v728_v28, %v727_v29  ;;  %v539_v34 = vadd.f32 %v2009_v18, %v538_v32  ;;  %v1050_v32 = vld [vmem:[%s2203_s8] sm:$0xff] }
 0x124   :  { %v730_v37 = vmax.f32 %v544_v30, 0.0 }
 0x125   :  { %v729_v39 = vmax.f32 %v539_v34, 0.0  ;;  %1550 = vmatprep.subr.bf16.mxu1 %v1549_v33  ;;  %v1448_v41 = vpop.f32.mrb[34].mxu0  ;;  %v1051_v33 = vld [vmem:[%s2203_s8 + $0x8] sm:$0xff] }
 0x126   :  { %v554_v46 = vadd.f32 %v1448_v41, %v2009_v18  ;;  %1552 = vmatpush3.bf16.msra.mxu1 %v2072_v16  ;;  %v548_v42 = vpop.f32.mrb[35].mxu0  ;;  %v1592_v34 = vpack.c.bf16 %v1051_v33, %v1050_v32 }
 0x127   :  { %v1555_v44 = vpack.c.bf16 %v730_v37, %v729_v39  ;;  %v549_v45 = vadd.f32 %v2009_v18, %v548_v42  ;;  %1554 = vmatprep.subr.bf16.mxu1 %v2028_v54  ;;  %v1052_v37 = vld [vmem:[%s2203_s8 + $0x10] sm:$0xff]  ;;  %v1053_v39 = vld [vmem:[%s2203_s8 + $0x18] sm:$0xff] }
 0x128   :  { %v732_v62 = vmax.f32 %v554_v46, 0.0  ;;  %v1595_v41 = vpack.c.bf16 %v1053_v39, %v1052_v37  ;;  %v1230_v46 = vld [vmem:[%s2200_s5] ss:$0 sm:$0xff] }
 0x129   :  { %v731_v47 = vmax.f32 %v549_v45, 0.0  ;;  %v1451_v48 = vpop.f32.mrb[36].mxu0  ;;  %849 = vmatmul.mubr.f32.vlgmr.msra.gmra.mrb[18].mxu1 %v2000_v14 }
 0x12a   :  { %v564_v50 = vadd.f32 %v1451_v48, %v2009_v18  ;;  %1556 = vmatpush3.bf16.msra.mxu1 %v1555_v44  ;;  %v558_v51 = vpop.f32.mrb[37].mxu0  ;;  %918 = vmatprep.mubr.f32.mxu1 %v779_v43 }
 0x12b   :  { %v1559_v16 = vpack.c.bf16 %v732_v62, %v731_v47  ;;  %v559_v53 = vadd.f32 %v2009_v18, %v558_v51  ;;  %1558 = vmatprep.subr.bf16.mxu1 %v2036_v4 }
 0x12c   :  { %v734_v55 = vmax.f32 %v564_v50, 0.0 }
 0x12d   :  { %v733_v56 = vmax.f32 %v559_v53, 0.0  ;;  %v1454_v57 = vpop.f32.mrb[38].mxu0 }
 0x12e   :  { %v574_v54 = vadd.f32 %v1454_v57, %v2009_v18  ;;  %1560 = vmatpush3.bf16.msra.mxu1 %v1559_v16  ;;  %v568_v58 = vpop.f32.mrb[39].mxu0 }
 0x12f   :  { %v1563_v59 = vpack.c.bf16 %v734_v55, %v733_v56  ;;  %v569_v14 = vadd.f32 %v2009_v18, %v568_v58  ;;  %1562 = vmatprep.subr.bf16.mxu1 %v2044_v21 }
 0x130   :  { %v736_v35 = vmax.f32 %v574_v54, 0.0 }
 0x131   :  { %v735_v60 = vmax.f32 %v569_v14, 0.0  ;;  %v1457_v61 = vpop.f32.mrb[40].mxu0 }
 0x132   :  { %v584_v0 = vadd.f32 %v1457_v61, %v2009_v18  ;;  %1564 = vmatpush3.bf16.msra.mxu1 %v1563_v59  ;;  %v578_v1 = vpop.f32.mrb[41].mxu0 }
 0x133   :  { %v1567_v4 = vpack.c.bf16 %v736_v35, %v735_v60  ;;  %v579_v2 = vadd.f32 %v2009_v18, %v578_v1  ;;  %1566 = vmatprep.subr.bf16.mxu1 %v2052_v36 }
 0x134   :  { %v738_v3 = vmax.f32 %v584_v0, 0.0 }
 0x135   :  { %v737_v49 = vmax.f32 %v579_v2, 0.0  ;;  %v1460_v6 = vpop.f32.mrb[42].mxu0 }
 0x136   :  { %v594_v7 = vadd.f32 %v1460_v6, %v2009_v18  ;;  %1568 = vmatpush3.bf16.msra.mxu1 %v1567_v4  ;;  %v588_v8 = vpop.f32.mrb[43].mxu0  ;;  %v1232_v4 = vld [vmem:[%s2201_s6] ss:$0 sm:$0xff] }
 0x137   :  { %v1571_v21 = vpack.c.bf16 %v738_v3, %v737_v49  ;;  %v589_v9 = vadd.f32 %v2009_v18, %v588_v8  ;;  %1570 = vmatprep.subr.bf16.mxu1 %v2060_v52  ;;  %v926_v52 = vld [vmem:[%s2199_s4] sm:$0xff] }
 0x138   :  { %v740_v10 = vmax.f32 %v594_v7, 0.0  ;;  %v1233_v3 = vld [vmem:[%s2202_s7] ss:$0 sm:$0xff] }
 0x139   :  { %v739_v11 = vmax.f32 %v589_v9, 0.0  ;;  %v1463_v63 = vpop.f32.mrb[44].mxu0 }
 0x13a   :  { %v604_v12 = vadd.f32 %v1463_v63, %v2009_v18  ;;  %1572 = vmatpush3.bf16.msra.mxu1 %v1571_v21  ;;  %v598_v15 = vpop.f32.mrb[45].mxu0 }
 0x13b   :  { %v1575_v36 = vpack.c.bf16 %v740_v10, %v739_v11  ;;  %v599_v19 = vadd.f32 %v2009_v18, %v598_v15  ;;  %1574 = vmatprep.subr.bf16.mxu1 %v2068_v5  ;;  %v927_v18 = vld [vmem:[%s2199_s4 + $0x8] sm:$0xff]  ;;  %v1661_v5 = vmov 0.0|0.0  }
 0x13c   :  { %v742_v20 = vmax.f32 %v604_v12, 0.0  ;;  %v1586_v13 = vpack.c.bf16 %v927_v18, %v926_v52 }
 0x13d   :  { %v741_v22 = vmax.f32 %v599_v19, 0.0 }
 0x13e   :  { %1576 = vmatpush3.bf16.msra.mxu1 %v1575_v36 }
 0x13f   :  { %v1579_v23 = vpack.c.bf16 %v742_v20, %v741_v22  ;;  %1578 = vmatprep.subr.bf16.mxu1 %v2076_v24  ;;  %v928_v24 = vld [vmem:[%s2199_s4 + $0x10] sm:$0xff] }
 0x142   :  { %1580 = vmatpush3.bf16.msra.mxu1 %v1579_v23 }
 0x143   :  { %1582 = vmatprep.subr.bf16.mxu1 %v2081_v38  ;;  %v1663_v38 = vmov 0.0  }
 0x146   :  { %1584 = vmatpush3.bf16.msra.mxu1 %v2020_v40 }
 0x147   :  { %1585 = vmatprep.subr.bf16.mxu1 %v1661_v5 }
 0x149   :  { %919 = vmatmul.mubr.f32.vlgmr.msra.gmra.mrb[20].mxu1 %v2004_v17  ;;  %v929_v17 = vld [vmem:[%s2199_s4 + $0x18] sm:$0xff] }
 0x14a   :  { %1587 = vmatpush3.bf16.msra.mxu1 %v1586_v13  ;;  %v1589_v40 = vpack.c.bf16 %v929_v17, %v928_v24  ;;  %1499 = vmatprep.mubr.msk.f32.mxu1 %vm1662_vm2, %v1663_v38 }
 0x14b   :  { %1588 = vmatprep.subr.bf16.mxu1 %v1661_v5 }
 0x14e   :  { %1590 = vmatpush3.bf16.msra.mxu1 %v1589_v40 }
 0x14f   :  { %1591 = vmatprep.subr.bf16.mxu1 %v1661_v5 }
 0x1fc   :  { %v1337_v25 = vpop.f32.mrb[18].mxu1 }
 0x1fd   :  { %v1338_v26 = vpop.f32.mrb[19].mxu1 }
 0x1fe   :  { %v1339_v27 = vadd.f32 %v1338_v26, %v1337_v25 }
 0x21c   :  { %v1372_v28 = vpop.f32.mrb[20].mxu1 }
 0x21d   :  { %v1373_v29 = vpop.f32.mrb[21].mxu1 }
 0x21e   :  { %v1374_v31 = vadd.f32 %v1373_v29, %v1372_v28 }
 0x220   :  { %v921_v30 = vadd.f32 %v1374_v31, %v1339_v27 }
 0x222   :  { %1500 = vmatmul.mubr.msk.f32.vlgmr.msra.gmra.mrb[22].mxu1 %vm937_vm3, %v921_v30  ;;  %925 = vst.msk [vmem:[#allocation2] sm:$0x3] %vm924_vm4, %v921_v30 }
 0x223   :  { %1510 = vmatprep.mubr.msk.f32.mxu1 %vm1662_vm2, %v1663_v38  ;;  %1593 = vmatpush3.bf16.msra.mxu1 %v1592_v34 }
 0x224   :  { %1594 = vmatprep.subr.bf16.mxu1 %v1661_v5 }
 0x227   :  { %1596 = vmatpush3.bf16.msra.mxu1 %v1595_v41 }
 0x2f5   :  { %v1007_v42 = vpop.f32.mrb[22].mxu1 }
 0x2f6   :  { %v1008_v43 = vadd.f32 %v1230_v46, %v1007_v42  ;;  %v1501_v44 = vpop.f32.mrb[23].mxu1 }
 0x2f8   :  { %v1011_v45 = vsel %vm924_vm4, %v1008_v43, 0.0 }
 0x2f9   :  { %v1012_v62 = vrot.slane %v1011_v45, 4 }
 0x2fb   :  { %v1013_v47 = vadd.f32 %v1012_v62, %v1011_v45 }
 0x2fd   :  { %v1014_v48 = vrot.slane %v1013_v47, 2 }
 0x2ff   :  { %v1015_v50 = vadd.f32 %v1014_v48, %v1013_v47 }
 0x301   :  { %v1016_v51 = vrot.slane %v1015_v50, 1 }
 0x303   :  { %v1017_v16 = vadd.f32 %v1016_v51, %v1015_v50 }
 0x305   :  { %v1019_v53 = vmul.f32 0.5, %v1017_v16 }
 0x307   :  { %v1020_v55 = vsub.f32 %v1008_v43, %v1019_v53 }
 0x309   :  { %v1021_v56 = vmul.f32 %v1020_v55, %v1020_v55 }
 0x30b   :  { %v1022_v57 = vsel %vm924_vm4, %v1021_v56, 0.0 }
 0x30c   :  { %v1023_v54 = vrot.slane %v1022_v57, 4 }
 0x30e   :  { %v1024_v58 = vadd.f32 %v1023_v54, %v1022_v57 }
 0x310   :  { %v1025_v59 = vrot.slane %v1024_v58, 2 }
 0x312   :  { %v1026_v14 = vadd.f32 %v1025_v59, %v1024_v58 }
 0x314   :  { %v1027_v35 = vrot.slane %v1026_v14, 1 }
 0x316   :  { %v1028_v60 = vadd.f32 %v1027_v35, %v1026_v14 }
 0x318   :  { %v1029_v61 = vmul.f32 0.5, %v1028_v60 }
 0x31a   :  { %v1030_v0 = vadd.f32 1e-05, %v1029_v61 }
 0x31c   :  { %1610 = vrsqrt.f32 %v1030_v0 }
 0x326   :  { %v1611_v1 = vpop.eup %1610 }
 0x327   :  { %v1032_v2 = vmul.f32 %v1611_v1, %v1020_v55 }
 0x329   :  { %v1040_v49 = vmul.f32 %v1232_v4, %v1032_v2 }
 0x32b   :  { %v1048_v6 = vadd.f32 %v1233_v3, %v1040_v49 }
 0x32d   :  { %v1049_v7 = vmax.f32 %v1048_v6, 0.0 }
 0x32f   :  { %1511 = vmatmul.mubr.msk.f32.vlgmr.msra.gmra.mrb[24].mxu1 %vm937_vm3, %v1049_v7 }
 0x330   :  { %1623 = shalt.err (!%p1620_p4)
}
 0x331   :  { %s1624_s2 = scalar_lea.hbm %s2205_s10, 32 }
 0x332   :  { %p1625_p5 = scmp.ne.s32.totalorder %s2205_s10, %s1624_s2  ;;  %p1628_p6 = scmp.lt.u32.totalorder %s1624_s2, %s2205_s10 }
 0x334   :  { %p1630_p7 = pnand %p1628_p6, %p1625_p5 }
 0x336   :  { %1633 = shalt.err (!%p1630_p7)
}
 0x337   :  { %1145 = dma.vmem_to_hbm [thread:$0]  %s1143_s16, 32, %s2205_s10, [#allocation3]   ;;  %v1234_v8 = vld [vmem:[%s2204_s9] ss:$0 sm:$0xff]  ;;  %vm1134_vm5 = vcmask 123904  }
 0x338   :  { %s1665_s4 = smov [#allocation4]  }
 0x339   :  { %s1152_s24 = sshll.u32 %s1665_s4, 4  ;;  %s1153_s24 = int_to_ptr.vmem [resolvable:$true] %s1152_s24 }
 0x33a   :  { %s1634_s25 = scalar_lea.vmem %s1153_s24, 32  ;;  %p1639_p9 = scmp.lt.s32.totalorder %s1153_s24, %s1153_s24 }
 0x33b   :  { %p1635_p8 = scmp.ne.s32.totalorder %s1153_s24, %s1634_s25  ;;  %p1640_p10 = scmp.lt.s32.totalorder %s1634_s25, %s1634_s25 }
 0x33d   :  { %p1641_p11 = por %p1640_p10, %p1639_p9 }
 0x33f   :  { %p1642_p12 = pnand %p1641_p11, %p1635_p8 }
 0x402   :  { %v1130_v21 = vpop.f32.mrb[24].mxu1 }
 0x403   :  { %v1131_v9 = vadd.f32 %v1234_v8, %v1130_v21  ;;  %v1512_v10 = vpop.f32.mrb[25].mxu1 }
 0x405   :  { %1135 = vst.msk [vmem:[#allocation4] sm:$0x3] %vm1134_vm5, %v1131_v9 }
 0x406   :  { %1645 = shalt.err (!%p1642_p12)
}
 0x407   :  { %s1646_s27 = scalar_lea.hbm %s2206_s11, 32 }
 0x408   :  { %p1647_p13 = scmp.ne.s32.totalorder %s2206_s11, %s1646_s27  ;;  %p1650_p0 = scmp.lt.u32.totalorder %s1646_s27, %s2206_s11 }
 0x40a   :  { %p1652_p1 = pnand %p1650_p0, %p1647_p13 }
 0x40c   :  { %1655 = shalt.err (!%p1652_p1)
}
 0x40d   :  { %1155 = dma.vmem_to_hbm [thread:$0]  %s1153_s24, 32, %s2206_s11, [#allocation5]  }
 0x40e   :  { %1656 = dma.done.wait [#allocation3], 32  }
 0x40f   :  { %1657 = vsyncadd [#allocation3], 4294967264 }
 0x410   :  { %1658 = dma.done.wait [#allocation5], 32  }
 0x411   :  { %1659 = vsyncadd [#allocation5], 4294967264 }
 0x412   :  { %1162 = vsyncpa [#allocation3], 1 }
 0x413   :  { %1163 = vsyncpa [#allocation5], 1 }

</bundles_post_ra>
